<compile_context>
chip_gen: v7x
topology: tpu7x:2x2x1
jax: 0.10.0
libtpu: 0.0.40
codegen_flags: <defaults>
</compile_context>

<pallas_src>
import functools

import jax
import jax.numpy as jnp
from jax.experimental import pallas as pl
from jax.experimental.pallas import tpu as pltpu


def _conv_bn_kernel(*refs, KH, KW, S, tOH, OW, Cin, residual, use_act):
    # refs (residual=True):  x_ref, w_ref, scale_ref, bias_ref, res_ref, o_ref
    # refs (residual=False): x_ref, w_ref, scale_ref, bias_ref, o_ref
    #
    # x_ref:     (1, IN_TH, W_pad, Cin) bf16   halo row tile of the padded input
    # w_ref:     (KH*KW*Cin, tCo)       bf16   im2col-flattened weights
    # scale_ref: (1, tCo)               f32    gamma / sqrt(var + eps)
    # bias_ref:  (1, tCo)               f32    beta + scale * (conv_bias - mean)
    # res_ref:   (1, tOH*OW, tCo)       f32    aligned residual tile (optional)
    # o_ref:     (1, tOH*OW, tCo)              lane-dense output tile
    if residual:
        x_ref, w_ref, scale_ref, bias_ref, res_ref, o_ref = refs
    else:
        x_ref, w_ref, scale_ref, bias_ref, o_ref = refs
        res_ref = None

    x = x_ref[0]                       # (IN_TH, W_pad, Cin), bf16
    M = tOH * OW

    # Per-tile im2col: gather the KH*KW taps once and contract them in a single
    # well-shaped MXU matmul (K = KH*KW*Cin, N = tCo) instead of 9 tiny ones.
    cols = []
    for kh in range(KH):
        for kw in range(KW):
            tap = jax.lax.slice(
                x,
                (kh, kw, 0),
                (kh + (tOH - 1) * S + 1, kw + (OW - 1) * S + 1, Cin),
                (S, S, 1),
            )                          # (tOH, OW, Cin)
            cols.append(tap.reshape(M, Cin))
    patches = jnp.concatenate(cols, axis=1)            # (M, KH*KW*Cin) bf16

    # Single bf16 matmul, f32 accumulation on the MXU.  The full contraction is
    # inside the block, so no cross-grid-step accumulator is needed.
    acc = jnp.dot(patches, w_ref[...],
                  preferred_element_type=jnp.float32)  # (M, tCo) f32

    # Fused conv-bias + BatchNorm (inference mode) in f32.
    out = acc * scale_ref[...] + bias_ref[...]

    if residual:
        # Aligned, unpadded residual tile: pure VALU add, hides under the matmul.
        out = out + res_ref[0].astype(jnp.float32)

    if use_act:
        out = jnp.maximum(out, 0.0)

    o_ref[0] = out.astype(o_ref.dtype)                 # lane-dense store (tCo=128)


def _pick_row_tile(OH, OW, W_pad, Cin, tCo, S, KH, budget_bytes=4 << 20):
    """Largest divisor of OH whose double-buffered working set fits the budget.

    Prefers >= 2 row tiles so input/weight/output DMAs pipeline and per-step
    VMEM stays bounded (v7x has only 64 MiB physical / 32 MiB scoped VMEM).
    """
    def ok(t):
        if OH % t:
            return False
        # (sublane) block dim of the flattened-spatial output must be 8-aligned
        # unless the block covers the whole image.
        if (t * OW) % 8 and t != OH:
            return False
        in_b = ((t - 1) * S + KH) * W_pad * Cin * 2     # bf16 conv-input tile
        out_b = t * OW * tCo * 4                        # f32 output tile
        res_b = t * OW * tCo * 4                        # residual tile (upper bound)
        return 2 * (in_b + out_b + res_b) <= budget_bytes

    fitting = [t for t in range(1, OH + 1) if ok(t)]
    if not fitting:
        return 1
    proper = [t for t in fitting if t < OH]
    if OH > 8 and proper:
        return max(proper)
    return max(fitting)


def conv2d_block(x_nchw, weight_oihw, conv_bias, gamma, beta, run_mean, run_var,
                 *, stride, padding, residual=False, use_act=True, eps=1e-5):
    """Forward pass of the PyTorch `Conv2d` module (BatchNorm in inference mode)."""
    N, Cin, H, W = x_nchw.shape
    Cout, Cin_w, KH, KW = weight_oihw.shape
    assert Cin_w == Cin
    S, PAD = stride, padding
    OH = (H + 2 * PAD - KH) // S + 1
    OW = (W + 2 * PAD - KW) // S + 1

    if residual:
        # PyTorch `out += x` only makes sense for a shape-preserving conv.
        assert S == 1 and OH == H and OW == W and Cout == Cin, (
            "residual=True requires stride=1, shape-preserving padding and Cin==Cout")

    # ---- channel padding: lane-dense output / MXU N dim (no-op when Cout>=128) --
    LANE = 128
    Cout_p = ((Cout + LANE - 1) // LANE) * LANE
    tCo = LANE
    nCT = Cout_p // tCo

    # ---- spatial row tiling (with KH-1 halo rows) -------------------------------
    H_pad, W_pad = H + 2 * PAD, W + 2 * PAD
    tOH = _pick_row_tile(OH, OW, W_pad, Cin, tCo, S, KH)
    nRT = OH // tOH
    IN_TH = (tOH - 1) * S + KH          # input rows needed per output-row tile

    # ---- wrapper glue: layout only, fused by XLA into one copy pass -------------
    x_nhwc = jnp.transpose(x_nchw, (0, 2, 3, 1))                       # (N,H,W,Cin)
    x_sp = jnp.pad(x_nhwc, ((0, 0), (PAD, PAD), (PAD, PAD), (0, 0)))   # zero pad
    row_idx = (jnp.arange(nRT) * (tOH * S))[:, None] + jnp.arange(IN_TH)[None, :]
    x_tiles = x_sp[:, row_idx]                                         # halo tiles
    x_tiles = x_tiles.reshape(N * nRT, IN_TH, W_pad, Cin).astype(jnp.bfloat16)
    # TODO(synk): for stride > 1, space-to-depth the input into SxS phases here so
    # the in-kernel taps are contiguous (avoids strided-slice relayouts).

    w_hwio = jnp.transpose(weight_oihw, (2, 3, 1, 0))                  # (KH,KW,Cin,Cout)
    w_p = jnp.pad(w_hwio, ((0, 0), (0, 0), (0, 0), (0, Cout_p - Cout)))
    w2d = w_p.reshape(KH * KW * Cin, Cout_p).astype(jnp.bfloat16)

    # Fold conv bias + BN running stats into per-channel scale/bias (f32).
    # TODO(synk): training-mode BatchNorm (batch statistics) is not implemented;
    # this matches the module in eval() mode.
    scale = (gamma / jnp.sqrt(run_var + eps)).astype(jnp.float32)
    bias = (beta + scale * (conv_bias - run_mean)).astype(jnp.float32)
    scale_p = jnp.pad(scale, (0, Cout_p - Cout)).reshape(1, Cout_p)
    bias_p = jnp.pad(bias, (0, Cout_p - Cout)).reshape(1, Cout_p)

    args = [x_tiles, w2d, scale_p, bias_p]
    in_specs = [
        # conv input: one halo row tile per (batch, row-tile); resident across ct.
        pl.BlockSpec((1, IN_TH, W_pad, Cin),
                     lambda b, rt, ct: (b * nRT + rt, 0, 0, 0)),
        # weights / scale / bias: tiled over Cout only (single-fetch when nCT==1).
        pl.BlockSpec((KH * KW * Cin, tCo), lambda b, rt, ct: (0, ct)),
        pl.BlockSpec((1, tCo), lambda b, rt, ct: (0, ct)),
        pl.BlockSpec((1, tCo), lambda b, rt, ct: (0, ct)),
    ]
    if residual:
        # Separate, aligned, unpadded residual ref, flattened like the output and
        # channel-padded so the in-kernel add is a full-width VALU op.
        res = x_nhwc.reshape(N, H * W, Cin)
        res = jnp.pad(res, ((0, 0), (0, 0), (0, Cout_p - Cin)))
        args.append(res)
        in_specs.append(
            pl.BlockSpec((1, tOH * OW, tCo), lambda b, rt, ct: (b, rt, ct)))

    kernel = functools.partial(
        _conv_bn_kernel,
        KH=KH, KW=KW, S=S, tOH=tOH, OW=OW, Cin=Cin,
        residual=residual, use_act=use_act,
    )

    out_flat = pl.pallas_call(
        kernel,
        out_shape=jax.ShapeDtypeStruct((N, OH * OW, Cout_p), x_nchw.dtype),
        grid_spec=pltpu.PrefetchScalarGridSpec(
            num_scalar_prefetch=0,
            grid=(N, nRT, nCT),
            in_specs=in_specs,
            out_specs=pl.BlockSpec((1, tOH * OW, tCo),
                                   lambda b, rt, ct: (b, rt, ct)),
        ),
        compiler_params=pltpu.CompilerParams(
            # No reduction grid axis (full contraction is inside the block), so
            # every axis is parallel -> v7x megacore can shard any of them.
            dimension_semantics=("parallel", "parallel", "parallel"),
            # Explicit VMEM budget: safe on v5e/v6e/v7x and far above what the
            # budgeted tiles actually use.
            vmem_limit_bytes=32 * 1024 * 1024,
        ),
    )(*args)

    out = out_flat.reshape(N, OH, OW, Cout_p)[..., :Cout]
    return jnp.transpose(out, (0, 3, 1, 2))           # back to NCHW


def _reference(x_nchw, weight_oihw, conv_bias, gamma, beta, run_mean, run_var,
               *, stride, padding, residual, use_act, eps=1e-5):
    out = jax.lax.conv_general_dilated(
        x_nchw, weight_oihw,
        window_strides=(stride, stride),
        padding=((padding, padding), (padding, padding)),
        dimension_numbers=("NCHW", "OIHW", "NCHW"),
    ) + conv_bias.reshape(1, -1, 1, 1)
    scale = gamma / jnp.sqrt(run_var + eps)
    out = (out - run_mean.reshape(1, -1, 1, 1)) * scale.reshape(1, -1, 1, 1) \
        + beta.reshape(1, -1, 1, 1)
    if residual:
        out = out + x_nchw
    if use_act:
        out = jnp.maximum(out, 0.0)
    return out


if __name__ == "__main__":
    # Module config: Conv2d(cin=4, cout=4, kernel_size=3, stride=1, padding=1,
    #                       residual=True, use_act=True)
    N, Cin, H, W = 2, 4, 16, 16
    Cout, K, stride, padding = 4, 3, 1, 1
    residual, use_act = True, True

    key = jax.random.PRNGKey(0)
    k_x, k_w, k_b, k_g, k_be, k_m, k_v = jax.random.split(key, 7)

    x = jax.random.normal(k_x, (N, Cin, H, W), dtype=jnp.float32)
    weight = jax.random.normal(k_w, (Cout, Cin, K, K), dtype=jnp.float32) * 0.1
    conv_bias = jax.random.normal(k_b, (Cout,), dtype=jnp.float32) * 0.1
    gamma = 1.0 + 0.1 * jax.random.normal(k_g, (Cout,), dtype=jnp.float32)
    beta = 0.1 * jax.random.normal(k_be, (Cout,), dtype=jnp.float32)
    run_mean = 0.1 * jax.random.normal(k_m, (Cout,), dtype=jnp.float32)
    run_var = jnp.abs(1.0 + 0.1 * jax.random.normal(k_v, (Cout,), dtype=jnp.float32))

    out = conv2d_block(x, weight, conv_bias, gamma, beta, run_mean, run_var,
                       stride=stride, padding=padding,
                       residual=residual, use_act=use_act)
    out = jax.block_until_ready(out)

    ref = _reference(x, weight, conv_bias, gamma, beta, run_mean, run_var,
                     stride=stride, padding=padding,
                     residual=residual, use_act=use_act)
    assert out.shape == (N, Cout, H, W)
    err = float(jnp.max(jnp.abs(out - ref)))
    assert err < 5e-2, err

    print("KERNEL_OK")
</pallas_src>

<mosaic_0001>
module attributes {stable_mosaic.version = 11 : i64} {
  func.func @_conv_bn_kernel(%arg0: i32, %arg1: i32, %arg2: i32, %arg3: memref<1x10x18x4xbf16, #tpu.memory_space<vmem>>, %arg4: memref<36x128xbf16, #tpu.memory_space<vmem>>, %arg5: memref<1x128xf32, #tpu.memory_space<vmem>>, %arg6: memref<1x128xf32, #tpu.memory_space<vmem>>, %arg7: memref<1x128x128xf32, #tpu.memory_space<vmem>>, %arg8: memref<1x128x128xf32, #tpu.memory_space<vmem>>) attributes {dimension_semantics = [#tpu.dimension_semantics<parallel>, #tpu.dimension_semantics<parallel>, #tpu.dimension_semantics<parallel>], iteration_bounds = array<i64: 2, 2, 1>, scalar_prefetch = 0 : i64, scratch_operands = 0 : i64, tpu.core_type = #tpu.core_type<tc>, window_params = [{transform_indices = @transform_0, window_bounds = array<i64: 1, 10, 18, 4>}, {transform_indices = @transform_1, window_bounds = array<i64: 36, 128>}, {transform_indices = @transform_2, window_bounds = array<i64: 1, 128>}, {transform_indices = @transform_3, window_bounds = array<i64: 1, 128>}, {transform_indices = @transform_4, window_bounds = array<i64: 1, 128, 128>}, {transform_indices = @transform_5, window_bounds = array<i64: 1, 128, 128>}]} {
    %c0 = arith.constant 0 : index
    %c0_0 = arith.constant 0 : index
    %c0_1 = arith.constant 0 : index
    %c0_2 = arith.constant 0 : index
    %0 = vector.load %arg3[%c0, %c0_0, %c0_1, %c0_2] : memref<1x10x18x4xbf16, #tpu.memory_space<vmem>>, vector<1x10x18x4xbf16>
    %1 = vector.shape_cast %0 : vector<1x10x18x4xbf16> to vector<10x18x4xbf16>
    %2 = vector.extract_strided_slice %1 {offsets = [0, 0, 0], sizes = [8, 16, 4], strides = [1, 1, 1]} : vector<10x18x4xbf16> to vector<8x16x4xbf16>
    %3 = vector.shape_cast %2 : vector<8x16x4xbf16> to vector<128x4xbf16>
    %4 = vector.extract_strided_slice %1 {offsets = [0, 1, 0], sizes = [8, 16, 4], strides = [1, 1, 1]} : vector<10x18x4xbf16> to vector<8x16x4xbf16>
    %5 = vector.shape_cast %4 : vector<8x16x4xbf16> to vector<128x4xbf16>
    %6 = vector.extract_strided_slice %1 {offsets = [0, 2, 0], sizes = [8, 16, 4], strides = [1, 1, 1]} : vector<10x18x4xbf16> to vector<8x16x4xbf16>
    %7 = vector.shape_cast %6 : vector<8x16x4xbf16> to vector<128x4xbf16>
    %8 = vector.extract_strided_slice %1 {offsets = [1, 0, 0], sizes = [8, 16, 4], strides = [1, 1, 1]} : vector<10x18x4xbf16> to vector<8x16x4xbf16>
    %9 = vector.shape_cast %8 : vector<8x16x4xbf16> to vector<128x4xbf16>
    %10 = vector.extract_strided_slice %1 {offsets = [1, 1, 0], sizes = [8, 16, 4], strides = [1, 1, 1]} : vector<10x18x4xbf16> to vector<8x16x4xbf16>
    %11 = vector.shape_cast %10 : vector<8x16x4xbf16> to vector<128x4xbf16>
    %12 = vector.extract_strided_slice %1 {offsets = [1, 2, 0], sizes = [8, 16, 4], strides = [1, 1, 1]} : vector<10x18x4xbf16> to vector<8x16x4xbf16>
    %13 = vector.shape_cast %12 : vector<8x16x4xbf16> to vector<128x4xbf16>
    %14 = vector.extract_strided_slice %1 {offsets = [2, 0, 0], sizes = [8, 16, 4], strides = [1, 1, 1]} : vector<10x18x4xbf16> to vector<8x16x4xbf16>
    %15 = vector.shape_cast %14 : vector<8x16x4xbf16> to vector<128x4xbf16>
    %16 = vector.extract_strided_slice %1 {offsets = [2, 1, 0], sizes = [8, 16, 4], strides = [1, 1, 1]} : vector<10x18x4xbf16> to vector<8x16x4xbf16>
    %17 = vector.shape_cast %16 : vector<8x16x4xbf16> to vector<128x4xbf16>
    %18 = vector.extract_strided_slice %1 {offsets = [2, 2, 0], sizes = [8, 16, 4], strides = [1, 1, 1]} : vector<10x18x4xbf16> to vector<8x16x4xbf16>
    %19 = vector.shape_cast %18 : vector<8x16x4xbf16> to vector<128x4xbf16>
    %20 = tpu.concatenate %3, %5, %7, %9, %11, %13, %15, %17, %19 in 1 : vector<128x4xbf16>, vector<128x4xbf16>, vector<128x4xbf16>, vector<128x4xbf16>, vector<128x4xbf16>, vector<128x4xbf16>, vector<128x4xbf16>, vector<128x4xbf16>, vector<128x4xbf16> -> vector<128x36xbf16>
    %c0_3 = arith.constant 0 : index
    %c0_4 = arith.constant 0 : index
    %21 = vector.load %arg4[%c0_3, %c0_4] : memref<36x128xbf16, #tpu.memory_space<vmem>>, vector<36x128xbf16>
    %cst = arith.constant dense<0.000000e+00> : vector<128x128xf32>
    %22 = tpu.matmul %20, %21, %cst {dimension_numbers = #tpu.dot_dimension_numbers<[1], [0], [0], [1], [0, 0, 1, 1], [], []>} : vector<128x36xbf16>, vector<36x128xbf16>, vector<128x128xf32> -> vector<128x128xf32>
    %c0_5 = arith.constant 0 : index
    %c0_6 = arith.constant 0 : index
    %23 = vector.load %arg5[%c0_5, %c0_6] : memref<1x128xf32, #tpu.memory_space<vmem>>, vector<1x128xf32>
    %24 = vector.broadcast %23 : vector<1x128xf32> to vector<128x128xf32>
    %25 = arith.mulf %22, %24 : vector<128x128xf32>
    %c0_7 = arith.constant 0 : index
    %c0_8 = arith.constant 0 : index
    %26 = vector.load %arg6[%c0_7, %c0_8] : memref<1x128xf32, #tpu.memory_space<vmem>>, vector<1x128xf32>
    %27 = vector.broadcast %26 : vector<1x128xf32> to vector<128x128xf32>
    %28 = arith.addf %25, %27 : vector<128x128xf32>
    %c0_9 = arith.constant 0 : index
    %c0_10 = arith.constant 0 : index
    %c0_11 = arith.constant 0 : index
    %29 = vector.load %arg7[%c0_9, %c0_10, %c0_11] : memref<1x128x128xf32, #tpu.memory_space<vmem>>, vector<1x128x128xf32>
    %30 = vector.shape_cast %29 : vector<1x128x128xf32> to vector<128x128xf32>
    %31 = arith.addf %28, %30 : vector<128x128xf32>
    %cst_12 = arith.constant 0.000000e+00 : f32
    %32 = vector.broadcast %cst_12 : f32 to vector<128x128xf32>
    %33 = arith.maximumf %31, %32 : vector<128x128xf32>
    %c0_13 = arith.constant 0 : index
    %c0_14 = arith.constant 0 : index
    %c0_15 = arith.constant 0 : index
    %34 = vector.load %arg8[%c0_13, %c0_14, %c0_15] : memref<1x128x128xf32, #tpu.memory_space<vmem>>, vector<1x128x128xf32>
    %35 = vector.shape_cast %34 : vector<1x128x128xf32> to vector<128x128xf32>
    %36 = vector.shape_cast %33 : vector<128x128xf32> to vector<1x128x128xf32>
    tpu.vector_store %arg8[%c0_13, %c0_14, %c0_15], %36 {strides = array<i32>} : memref<1x128x128xf32, #tpu.memory_space<vmem>>, vector<1x128x128xf32>,
    return
  }
  func.func @transform_0(%arg0: i32, %arg1: i32, %arg2: i32) -> (i32, i32, i32, i32) {
    %c2_i32 = arith.constant 2 : i32
    %0 = arith.muli %arg0, %c2_i32 : i32
    %1 = arith.addi %0, %arg1 : i32
    %c0_i32 = arith.constant 0 : i32
    %c0_i32_0 = arith.constant 0 : i32
    %c0_i32_1 = arith.constant 0 : i32
    %c0_i32_2 = arith.constant 0 : i32
    return %1, %c0_i32, %c0_i32_0, %c0_i32_1 : i32, i32, i32, i32
  }
  func.func @transform_1(%arg0: i32, %arg1: i32, %arg2: i32) -> (i32, i32) {
    %c0_i32 = arith.constant 0 : i32
    %c0_i32_0 = arith.constant 0 : i32
    return %c0_i32, %arg2 : i32, i32
  }
  func.func @transform_2(%arg0: i32, %arg1: i32, %arg2: i32) -> (i32, i32) {
    %c0_i32 = arith.constant 0 : i32
    %c0_i32_0 = arith.constant 0 : i32
    return %c0_i32, %arg2 : i32, i32
  }
  func.func @transform_3(%arg0: i32, %arg1: i32, %arg2: i32) -> (i32, i32) {
    %c0_i32 = arith.constant 0 : i32
    %c0_i32_0 = arith.constant 0 : i32
    return %c0_i32, %arg2 : i32, i32
  }
  func.func @transform_4(%arg0: i32, %arg1: i32, %arg2: i32) -> (i32, i32, i32) {
    %c0_i32 = arith.constant 0 : i32
    return %arg0, %arg1, %arg2 : i32, i32, i32
  }
  func.func @transform_5(%arg0: i32, %arg1: i32, %arg2: i32) -> (i32, i32, i32) {
    %c0_i32 = arith.constant 0 : i32
    return %arg0, %arg1, %arg2 : i32, i32, i32
  }
}

</mosaic_0001>

<bundles_post_ra>
// kernel: tpu_custom_call.1
= control target key start
LH: loop header
LB: loop body
LE: loop exit
PB: predicated region body
PF: predicated region fallthrough
CT: control target
= control target key end

     0   :  { %s2640_s0 = inlined_call_operand.vmem [shape: bf16[4,10,18,4], index: 0, kind: input, shape index: {}]   ;;  %s2641_s1 = inlined_call_operand.vmem [shape: bf16[36,128], index: 1, kind: input, shape index: {}]   ;;  %s2642_s2 = inlined_call_operand.vmem [shape: f32[1,128], index: 2, kind: input, shape index: {}]   ;;  %s2643_s3 = inlined_call_operand.vmem [shape: f32[1,128], index: 3, kind: input, shape index: {}]   ;;  %s2644_s4 = inlined_call_operand.vmem [shape: f32[2,256,128], index: 4, kind: input, shape index: {}]   ;;  %s2645_s5 = inlined_call_operand.hbm [shape: f32[2,256,128], index: 5, kind: output, shape index: {}]  }
   0x1   :  { %2647 = sst [smem:[#allocation5_spill]] %s2640_s0 }
   0x2   :  { %10 = vsyncpa [#allocation3], 0 }
   0x3   :  { %12 = vsyncpa [#allocation3 + $0x1], 0  ;;  %s1843_s18 = smov 0   ;;  %s1845_s19 = smov 0  }
   0x4   :  { %s1847_s20 = smov 0   ;;  %s1849_s21 = smov 0  }
   0x5   :  { %s1851_s22 = smov 0   ;;  %s1853_s23 = smov 0  }
   0x6   :  { %s1855_s24 = smov 0   ;;  %s1857_s25 = smov 0  }
   0x7 LB: > { %s1497_s26 = sadd.s32 4294967295, %s1801_s25   ;;  %s1498_s27 = sadd.s32 4294967294, %s1801_s25   ;;  %s1801_s25 = sphi %s1857_s25, %s18_s25   ;;  %s1797_s24 = sphi %s1855_s24, %s2662_s24   ;;  %s1793_s23 = sphi %s1853_s23, %s2661_s23   ;;  %s1789_s22 = sphi %s1851_s22, %s2660_s22   ;;  %s1785_s21 = sphi %s1849_s21, %s2659_s21   ;;  %s1781_s20 = sphi %s1847_s20, %s2658_s20   ;;  %s1777_s19 = sphi %s1845_s19, %s2657_s19   ;;  %s1773_s18 = sphi %s1843_s18, %s2656_s18  }
   0x8   : > { %s33_s28 = sadd.s32 1, %s1793_s23  ;;  %s37_s29 = sadd.s32 1, %s1797_s24 }
   0x9   : > { %p35_p0 = scmp.ge.s32.totalorder %s33_s28, 2  ;;  %p196_p1 = scmp.ne.s32.totalorder %s1781_s20, %s1777_s19 }
   0xa   : > { %p197_p2 = scmp.eq.s32.totalorder %s1497_s26, 3  ;;  %p202_p5 = scmp.ne.s32.totalorder %s1777_s19, %s1773_s18 }
   0xb   : > { %s2664_s28 = smov (%p35_p0, %s33_s28), 0  ;;  %s2666_s29 = smov (!%p35_p0, %s37_s29), %s1797_s24 }
   0xc   : > { %s180_s30 = ssub.s32 %s1793_s23, %s2664_s28  ;;  %p1894_p3 = por %p197_p2, %p196_p1 }
   0xd   : > { %p39_p4 = scmp.ge.s32.totalorder %s2666_s29, 2  ;;  %p203_p6 = scmp.eq.s32.totalorder %s1498_s27, 3 }
   0xe   : > { %p1506_p7 = scmp.ge.s32.totalorder %s1801_s25, 1  ;;  %p268_p9 = scmp.lt.s32.totalorder %s1801_s25, 5 }
   0xf   : > { %s2668_s29 = smov (%p39_p4, %s2666_s29), 0  ;;  %p1903_p8 = por %p203_p6, %p202_p5 }
  0x10   : > { %s179_s8 = ssub.s32 %s1797_s24, %s2668_s29  ;;  %s186_s9 = sadd.s32 1, %s1781_s20 }
  0x11   : > { %s181_s10 = sor.u32 %s180_s30, %s179_s8  ;;  %p269_p10 = pnand %p1506_p7, %p268_p9 }
  0x12   : > { %p184_p11 = scmp.eq.s32.totalorder %s181_s10, 0  ;;  %s1508_s12 = sshll.u32 (!%p269_p10), %s1789_s22, 1  ;;  %vm603_vm0 = vcmask (!%p269_p10), 1042432   ;;  %vm604_vm1 = vcmask (!%p269_p10), 1046532   ;;  %vm384_vm2 = vsmask.f32 (!%p269_p10), 3328 }
  0x13   : > { %272 = sbr.rel (%p269_p10) target bundleno = 523 (0x20b), region = 40  ;;  %s321_s13 = sadd.s32 (!%p269_p10), %s1785_s21, %s1508_s12  ;;  %vm385_vm3 = vsmask.f32 (!%p269_p10), 7440  ;;  %vm1990_vm4 = vmor (!%p269_p10), %vm603_vm0, %vm604_vm1  ;;  %vm1129_vm6 = vcmask (!%p269_p10), 1041408   ;;  %vm948_vm7 = vcmask (!%p269_p10), 31744   ;;  %vm973_vm8 = vcmask (!%p269_p10), 64512  }
  0x14   : > { %s1912_s11 = scalar_select %p184_p11, %s1781_s20, %s186_s9  }
  0x15   : > { %p322_p12 = scmp.lt.s32.totalorder (!%p269_p10), %s321_s13, 3  ;;  %s2650_s0 = sld [smem:[#allocation5_spill]] (!%p269_p10)  ;;  %vm2040_vm5 = vmor (!%p269_p10), %vm384_vm2, %vm385_vm3  ;;  %vm990_vm9 = vcmask (!%p269_p10), 97280   ;;  %vm1007_vm10 = vcmask (!%p269_p10), 130048   ;;  %vm1024_vm11 = vcmask (!%p269_p10), 162816   ;;  %vm1041_vm12 = vcmask (!%p269_p10), 195584  }
  0x16   : > { %s1803_s26 = smov (!%p269_p10), 12   ;;  %s2646_s27 = smov (!%p269_p10), 8   ;;  %vm1058_vm13 = vcmask (!%p269_p10), 228352   ;;  %vm1075_vm14 = vcmask (!%p269_p10), 261120   ;;  %vm1112_vm15 = vcmask (!%p269_p10), 293888  }
  0x17   : > { %s1805_s30 = smov (!%p269_p10), 4   ;;  %s1806_s8 = smov (!%p269_p10), 16  }
  0x18   : > { %s1807_s9 = smov (!%p269_p10), 20   ;;  %s1808_s10 = smov (!%p269_p10), 24  }
  0x19   : > { %p340_p13 = scmp.lt.s32.totalorder (!%p269_p10), %s1789_s22, 1 }
  0x1a   : > { %s2670_s13 = smov (!%p322_p12, %s321_s13), 3 }
  0x1b   : > { %s1613_s14 = smul.u32 120, %s2670_s13  ;;  %s1810_s13 = smov 32  }
  0x1d   : > { %s1919_s17 = scalar_lea.vmem %s2650_s0, %s1613_s14  ;;  %s1809_s14 = smov 28  }
  0x1e   : > { %v1922_v0 = vld [vmem:[%s1919_s17 + $0x3c] sm:$0xf]  ;;  %v1925_v1 = vld [vmem:[%s1919_s17 + $0x40] sm:$0xf]  ;;  %v1928_v2 = vld [vmem:[%s1919_s17 + $0xc] sm:$0xf] }
  0x1f   : > { %v521_v3 = vshrl.u32 %v1925_v1, 16  ;;  %v1933_v4 = vcombine.low %v1922_v0, %v1925_v1  ;;  %v508_v5 = vshrl.u32 %v1922_v0, 16  ;;  %v511_v6 = vshll.u32 %v1922_v0, 16  ;;  %v1938_v7 = vld [vmem:[%s1919_s17 + $0x10] sm:$0xf] }
  0x20   : > { %v421_v8 = vshll.u32 %v1938_v7, 16  ;;  %v425_v9 = vshrl.u32 %v1938_v7, 16  ;;  %v1944_v10 = vcombine.low %v1928_v2, %v1938_v7  ;;  %v412_v11 = vshrl.u32 %v1928_v2, 16  ;;  %v1948_v12 = vld [vmem:[%s1919_s17 + $0x48] sm:$0xf] }
  0x21   : > { %845 = vrot.lane.b32.xlu1 %v1933_v4, %s1803_s26  ;;  %v415_v13 = vshll.u32 %v1928_v2, 16  ;;  %v1954_v14 = vld [vmem:[%s1919_s17 + $0x4c] sm:$0xf]  ;;  %v532_v15 = vshrl.u32 %v1948_v12, 16  ;;  %v535_v16 = vshll.u32 %v1948_v12, 16  ;;  %v1518_v17 = vrot.slane %v1922_v0, 9 }
  0x22   : > { %v1959_v18 = vrot.slane %v425_v9, 4  ;;  %837 = vrot.lane.b32.xlu0 %v1944_v10, %s1803_s26  ;;  %v414_v19 = vrot.slane %v412_v11, 4  ;;  %v545_v20 = vshrl.u32 %v1954_v14, 16  ;;  %v1966_v21 = vcombine.low %v1948_v12, %v1954_v14  ;;  %v1969_v22 = vld [vmem:[%s1919_s17 + $0x18] sm:$0xf] }
  0x23   : > { %v417_v23 = vrot.slane %v415_v13, 5  ;;  %v1972_v24 = vld [vmem:[%s1919_s17 + $0x1c] sm:$0xf]  ;;  %v436_v25 = vshrl.u32 %v1969_v22, 16  ;;  %v439_v26 = vshll.u32 %v1969_v22, 16  ;;  %v643_v27 = vrot.slane %v1925_v1, 5 }
  0x24   : > { %v449_v28 = vshrl.u32 %v1972_v24, 16  ;;  %v1980_v29 = vcombine.low %v1969_v22, %v1972_v24  ;;  %v1983_v30 = vld [vmem:[%s1919_s17 + $0x30] sm:$0xf]  ;;  %v1986_v31 = vld [vmem:[%s1919_s17 + $0x34] sm:$0xf]  ;;  %v1514_v33 = vrot.slane %v1928_v2, 9 }
  0x25   : > { %847 = vrot.lane.b32.xlu1 %v1966_v21, %s1803_s26  ;;  %v1998_v34 = vld [vmem:[%s1919_s17 + $0x38] sm:$0x1]  ;;  %v1517_v35 = vrot.slane %v1983_v30, 9  ;;  %v636_v36 = vrot.slane %v1986_v31, 5  ;;  %v2003_v37 = vld [vmem:[%s1919_s17] sm:$0xf]  ;;  %v418_v38 = vor.u32 %v417_v23, %v414_v19  ;;  %v644_v43 = vsel %vm1990_vm4, %v1518_v17, %v643_v27 }
  0x26   : > { %839 = vrot.lane.b32.xlu0 %v1980_v29, %s1803_s26  ;;  %v639_v39 = vrot.slane %v1998_v34, 5  ;;  %v2009_v40 = vld [vmem:[%s1919_s17 + $0x4] sm:$0xf]  ;;  %v356_v41 = vld [vmem:[%s1919_s17 + $0x8] sm:$0x1]  ;;  %v1513_v42 = vrot.slane %v2003_v37, 9  ;;  %v2017_v44 = vcombine.low %v1983_v30, %v1986_v31 }
  0x27   : > { %v637_v45 = vsel %vm1990_vm4, %v1517_v35, %v636_v36  ;;  %v638_v46 = vrot.slane %v636_v36, 4  ;;  %v608_v47 = vrot.slane %v2009_v40, 5  ;;  %v611_v48 = vrot.slane %v356_v41, 5  ;;  %v2023_v49 = vld [vmem:[%s1919_s17 + $0x44] sm:$0x1] }
  0x28   : > { %v645_v50 = vrot.slane %v643_v27, 4  ;;  %v646_v51 = vrot.slane %v2023_v49, 5  ;;  %v359_v52 = vld [vmem:[%s1919_s17 + $0x14] sm:$0x1]  ;;  %v615_v53 = vrot.slane %v1938_v7, 5  ;;  %v419_v54 = vrot.slane %v418_v38, 4 }
  0x29   : > { %v640_v55 = vsel %vm1990_vm4, %v638_v46, %v639_v39  ;;  %v609_v56 = vsel %vm1990_vm4, %v1513_v42, %v608_v47  ;;  %v610_v57 = vrot.slane %v608_v47, 4  ;;  %v618_v58 = vrot.slane %v359_v52, 5 }
  0x2a   : > { %v2032_v59 = vcombine.low %v637_v45, %v640_v55  ;;  %v647_v60 = vsel %vm1990_vm4, %v645_v50, %v646_v51  ;;  %v616_v61 = vsel %vm1990_vm4, %v1514_v33, %v615_v53  ;;  %v617_v62 = vrot.slane %v615_v53, 4 }
  0x2b   : > { %v612_v2 = vsel %vm1990_vm4, %v610_v57, %v611_v48  ;;  %v2046_v9 = vcombine.low %v644_v43, %v647_v60  ;;  %v423_v11 = vrot.slane %v421_v8, 5  ;;  %v431_v13 = vshll.u32 %v359_v52, 16 }
  0x2c   : > { %826 = vrot.lane.b32.xlu1 %v2032_v59, %s2646_s27  ;;  %v1539_v17 = vcombine.low %v609_v56, %v612_v2  ;;  %v619_v19 = vsel %vm1990_vm4, %v617_v62, %v618_v58  ;;  %v388_v23 = vshrl.u32 %v2003_v37, 16  ;;  %v391_v27 = vshll.u32 %v2003_v37, 16 }
  0x2d   : > { %v2056_v33 = vcombine.low %v616_v61, %v619_v19  ;;  %v424_v35 = vsel %vm2040_vm5, %v419_v54, %v423_v11  ;;  %v428_v7 = vor.u32 %v1959_v18, %v423_v11  ;;  %v433_v8 = vrot.slane %v431_v13, 5 }
  0x2e   : > { %818 = vrot.lane.b32.xlu0 %v1539_v17, %s2646_s27  ;;  %v390_v36 = vrot.slane %v388_v23, 4  ;;  %v393_v38 = vrot.slane %v391_v27, 5  ;;  %v397_v39 = vshll.u32 %v2009_v40, 16  ;;  %v401_v42 = vshrl.u32 %v2009_v40, 16 }
  0x2f   : > { %v429_v43 = vrot.slane %v428_v7, 4  ;;  %v407_v45 = vshll.u32 %v356_v41, 16  ;;  %v510_v46 = vrot.slane %v508_v5, 4  ;;  %v513_v47 = vrot.slane %v511_v6, 5 }
  0x30   : > { %828 = vrot.lane.b32.xlu1 %v2046_v9, %s2646_s27  ;;  %v394_v18 = vor.u32 %v393_v38, %v390_v36  ;;  %v399_v48 = vrot.slane %v397_v39, 5  ;;  %v403_v50 = vrot.slane %v401_v42, 4  ;;  %v517_v51 = vshll.u32 %v1925_v1, 16 }
  0x31   : > { %v434_v52 = vsel %vm2040_vm5, %v429_v43, %v433_v8  ;;  %v409_v53 = vrot.slane %v407_v45, 5  ;;  %v514_v54 = vor.u32 %v513_v47, %v510_v46  ;;  %v523_v41 = vrot.slane %v521_v3, 4  ;;  %v374_v8 = vld [vmem:[%s1919_s17 + $0x50] sm:$0x1] }
  0x32   : > { %820 = vrot.lane.b32.xlu0 %v2056_v33, %s2646_s27  ;;  %v2077_v0 = vcombine.low %v424_v35, %v434_v52  ;;  %v395_v5 = vrot.slane %v394_v18, 4  ;;  %v404_v6 = vor.u32 %v403_v50, %v399_v48  ;;  %v519_v55 = vrot.slane %v517_v51, 5  ;;  %v2107_v50 = vld [vmem:[%s1919_s17 + $0x20] sm:$0x1] }
  0x33   : > { %v515_v56 = vrot.slane %v514_v54, 4  ;;  %v527_v57 = vshll.u32 %v2023_v49, 16  ;;  %v484_v58 = vshrl.u32 %v1983_v30, 16  ;;  %v487_v60 = vshll.u32 %v1983_v30, 16 }
  0x34   : > { %780 = vrot.lane.b32.xlu1 %v2077_v0, %s1805_s30  ;;  %v400_v1 = vsel %vm2040_vm5, %v395_v5, %v399_v48  ;;  %v405_v3 = vrot.slane %v404_v6, 4  ;;  %v524_v61 = vor.u32 %v523_v41, %v519_v55  ;;  %v493_v62 = vshll.u32 %v1986_v31, 16 }
  0x35   : > { %v520_v2 = vsel %vm2040_vm5, %v515_v56, %v519_v55  ;;  %v529_v49 = vrot.slane %v527_v57, 5  ;;  %v486_v11 = vrot.slane %v484_v58, 4  ;;  %v489_v13 = vrot.slane %v487_v60, 5 }
  0x36   : > { %v410_v30 = vsel %vm2040_vm5, %v405_v3, %v409_v53  ;;  %v525_v17 = vrot.slane %v524_v61, 4  ;;  %v495_v19 = vrot.slane %v493_v62, 5  ;;  %v497_v23 = vshrl.u32 %v1986_v31, 16  ;;  %v2130_v61 = vld [vmem:[%s1919_s17 + $0x54] sm:$0xf] }
  0x37   : > { %v1531_v27 = vcombine.low %v400_v1, %v410_v30  ;;  %v490_v35 = vor.u32 %v489_v13, %v486_v11  ;;  %v503_v7 = vshll.u32 %v1998_v34, 16  ;;  %v534_v36 = vrot.slane %v532_v15, 4 }
  0x38   : > { %v530_v38 = vsel %vm2040_vm5, %v525_v17, %v529_v49  ;;  %v499_v39 = vrot.slane %v497_v23, 4  ;;  %v537_v42 = vrot.slane %v535_v16, 5  ;;  %v541_v43 = vshll.u32 %v1954_v14, 16  ;;  %v2141_v17 = vld [vmem:[%s1919_s17 + $0x58] sm:$0xf] }
  0x39   : > { %778 = vrot.lane.b32.xlu0 %v1531_v27, %s1805_s30  ;;  %v2102_v31 = vcombine.low %v520_v2, %v530_v38  ;;  %v491_v45 = vrot.slane %v490_v35, 4  ;;  %v505_v34 = vrot.slane %v503_v7, 5  ;;  %v547_v46 = vrot.slane %v545_v20, 4 }
  0x3a   : > { %v500_v47 = vor.u32 %v499_v39, %v495_v19  ;;  %v538_v15 = vor.u32 %v537_v42, %v534_v36  ;;  %v543_v18 = vrot.slane %v541_v43, 5  ;;  %v551_v48 = vshll.u32 %v374_v8, 16 }
  0x3b   : > { %788 = vrot.lane.b32.xlu1 %v2102_v31, %s1805_s30  ;;  %v496_v16 = vsel %vm2040_vm5, %v491_v45, %v495_v19  ;;  %v438_v51 = vrot.slane %v436_v25, 4  ;;  %v441_v52 = vrot.slane %v439_v26, 5  ;;  %v445_v20 = vshll.u32 %v1972_v24, 16 }
  0x3c   : > { %v501_v53 = vrot.slane %v500_v47, 4  ;;  %v539_v54 = vrot.slane %v538_v15, 4  ;;  %v548_v41 = vor.u32 %v547_v46, %v543_v18  ;;  %v553_v5 = vrot.slane %v551_v48, 5 }
  0x3d   : > { %v442_v6 = vor.u32 %v441_v52, %v438_v51  ;;  %v447_v55 = vrot.slane %v445_v20, 5  ;;  %v451_v56 = vrot.slane %v449_v28, 4  ;;  %v455_v57 = vshll.u32 %v2107_v50, 16 }
  0x3e   : > { %v506_v25 = vsel %vm2040_vm5, %v501_v53, %v505_v34  ;;  %v544_v26 = vsel %vm2040_vm5, %v539_v54, %v543_v18  ;;  %v549_v58 = vrot.slane %v548_v41, 4  ;;  %v1519_v2 = vrot.slane %v1948_v12, 9  ;;  %v2148_v12 = vld [vmem:[%s1919_s17 + $0x24] sm:$0xf]  ;;  %v2177_v18 = vld [vmem:[%s1919_s17 + $0x5c] sm:$0x1] }
  0x3f   : > { %v2125_v60 = vcombine.low %v496_v16, %v506_v25  ;;  %864 = vrot.lane.b32.xlu1 %v2102_v31, %s1806_s8  ;;  %v443_v1 = vrot.slane %v442_v6, 4  ;;  %v452_v3 = vor.u32 %v451_v56, %v447_v55  ;;  %v457_v28 = vrot.slane %v455_v57, 5  ;;  %v2186_v41 = vld [vmem:[%s1919_s17 + $0x2c] sm:$0x1] }
  0x40   : > { %v554_v62 = vsel %vm2040_vm5, %v549_v58, %v553_v5  ;;  %v650_v49 = vrot.slane %v1954_v14, 5  ;;  %v653_v11 = vrot.slane %v374_v8, 5  ;;  %v622_v27 = vrot.slane %v1972_v24, 5  ;;  %v2156_v8 = vld [vmem:[%s1919_s17 + $0x28] sm:$0xf] }
  0x41   : > { %786 = vrot.lane.b32.xlu0 %v2125_v60, %s1805_s30  ;;  %v2138_v13 = vcombine.low %v544_v26, %v554_v62  ;;  %v453_v30 = vrot.slane %v452_v3, 4  ;;  %v448_v19 = vsel %vm2040_vm5, %v443_v1, %v447_v55  ;;  %v556_v35 = vshrl.u32 %v2130_v61, 16  ;;  %v2204_v62 = vld [vmem:[%s1919_s17 + $0x60] sm:$0xf] }
  0x42   : > { %v652_v23 = vrot.slane %v650_v49, 4  ;;  %v559_v7 = vshll.u32 %v2130_v61, 16  ;;  %v651_v36 = vsel %vm1990_vm4, %v1519_v2, %v650_v49  ;;  %v569_v38 = vshrl.u32 %v2141_v17, 16 }
  0x43   : > { %866 = vrot.lane.b32.xlu1 %v2138_v13, %s1806_s8  ;;  %v458_v14 = vsel %vm2040_vm5, %v453_v30, %v457_v28  ;;  %v1515_v42 = vrot.slane %v1969_v22, 9  ;;  %v460_v43 = vshrl.u32 %v2148_v12, 16  ;;  %v463_v45 = vshll.u32 %v2148_v12, 16 }
  0x44   : > { %v654_v24 = vsel %vm1990_vm4, %v652_v23, %v653_v11  ;;  %v2165_v39 = vcombine.low %v448_v19, %v458_v14  ;;  %v624_v34 = vrot.slane %v622_v27, 4  ;;  %v625_v46 = vrot.slane %v2107_v50, 5  ;;  %v2207_v11 = vld [vmem:[%s1919_s17 + $0x64] sm:$0xf] }
  0x45   : > { %856 = vrot.lane.b32.xlu0 %v2077_v0, %s1806_s8  ;;  %v473_v47 = vshrl.u32 %v2156_v8, 16  ;;  %v558_v15 = vrot.slane %v556_v35, 4  ;;  %v2174_v0 = vcombine.low %v651_v36, %v654_v24  ;;  %v561_v22 = vrot.slane %v559_v7, 5  ;;  %v380_v36 = vld [vmem:[%s1919_s17 + $0x68] sm:$0x1] }
  0x46   : > { %v565_v48 = vshll.u32 %v2141_v17, 16  ;;  %v571_v16 = vrot.slane %v569_v38, 4  ;;  %v462_v51 = vrot.slane %v460_v43, 4  ;;  %v465_v52 = vrot.slane %v463_v45, 5  ;;  %v2239_v45 = vld [vmem:[%s1919_s17 + $0x6c] sm:$0xf] }
  0x47   : > { %883 = vrot.lane.b32.xlu1 %v2046_v9, %s1807_s9  ;;  %v469_v50 = vshll.u32 %v2156_v8, 16  ;;  %v623_v20 = vsel %vm1990_vm4, %v1515_v42, %v622_v27  ;;  %v562_v53 = vor.u32 %v561_v22, %v558_v15  ;;  %v475_v5 = vrot.slane %v473_v47, 4  ;;  %v2245_v22 = vld [vmem:[%s1919_s17 + $0x70] sm:$0xf] }
  0x48   : > { %v567_v54 = vrot.slane %v565_v48, 5  ;;  %v626_v6 = vsel %vm1990_vm4, %v624_v34, %v625_v46  ;;  %v575_v55 = vshll.u32 %v2177_v18, 16  ;;  %v466_v56 = vor.u32 %v465_v52, %v462_v51 }
  0x49   : > { %858 = vrot.lane.b32.xlu0 %v2165_v39, %s1806_s8  ;;  %v2191_v57 = vrot.slane %v469_v50, 5  ;;  %v479_v26 = vshll.u32 %v2186_v41, 16  ;;  %v2198_v58 = vcombine.low %v623_v20, %v626_v6  ;;  %v563_v1 = vrot.slane %v562_v53, 4  ;;  %v1704_v50 = vld [vmem:[%s2641_s1] sm:$0xff]  }
  0x4a   : > { %v572_v25 = vor.u32 %v571_v16, %v567_v54  ;;  %v2200_v3 = vrot.slane %v466_v56, 4  ;;  %v577_v49 = vrot.slane %v575_v55, 5  ;;  %v2217_v30 = vcombine.low %v2148_v12, %v2156_v8  ;;  %1583 = vmatprep.subr.bf16.mxu0 %v1704_v50  ;;  %1605 = vmatprep.subr.bf16.mxu1 %v1704_v50 }
  0x4b   : > { %885 = vrot.lane.b32.xlu1 %v2174_v0, %s1807_s9  ;;  %v476_v28 = vor.u32 %v475_v5, %v2191_v57  ;;  %v1520_v19 = vrot.slane %v2130_v61, 9  ;;  %v657_v23 = vrot.slane %v2141_v17, 5  ;;  %v2221_v27 = vrot.slane %v479_v26, 5  ;;  %1584 = vmatpush3.bf16.msra.mxu0 %v1704_v50 }
  0x4c   : > { %v573_v2 = vrot.slane %v572_v25, 4  ;;  %v660_v35 = vrot.slane %v2177_v18, 5  ;;  %v663_v14 = vshrl.u32 %v2204_v62, 16  ;;  %v666_v7 = vshll.u32 %v2204_v62, 16  ;;  %1608 = vmatpush3.bf16.msra.mxu1 %v1704_v50 }
  0x4d   : > { %875 = vrot.lane.b32.xlu0 %v2056_v33, %s1807_s9  ;;  %v2213_v33 = vcombine.low %v2130_v61, %v2141_v17  ;;  %v568_v24 = vsel %vm2040_vm5, %v563_v1, %v567_v54  ;;  %v472_v38 = vsel %vm2040_vm5, %v2200_v3, %v2191_v57  ;;  %v2235_v42 = vrot.slane %v476_v28, 4 }
  0x4e   : > { %v676_v43 = vshrl.u32 %v2207_v11, 16  ;;  %v578_v34 = vsel %vm2040_vm5, %v573_v2, %v577_v49  ;;  %v665_v46 = vrot.slane %v663_v14, 4  ;;  %v668_v47 = vrot.slane %v666_v7, 5  ;;  %v383_v49 = vld [vmem:[%s1919_s17 + $0x74] sm:$0x1]  ;;  %s1811_s17 = smov [#allocation2]  }
  0x4f   : > { %902 = vrot.lane.b32.xlu1 %v1966_v21, %s1808_s10  ;;  %v672_v15 = vshll.u32 %v2207_v11, 16  ;;  %v682_v16 = vshll.u32 %v380_v36, 16  ;;  %v1521_v51 = vrot.slane %v2204_v62, 9  ;;  %v691_v52 = vrot.slane %v2207_v11, 5  ;;  %s1711_s12 = sshll.u32 %s1811_s17, 4  ;;  %s1712_s12 = int_to_ptr.vmem [resolvable:$false] %s1711_s12 }
  0x50   : > { %v678_v48 = vrot.slane %v676_v43, 4  ;;  %v669_v20 = vor.u32 %v668_v47, %v665_v46  ;;  %v694_v54 = vrot.slane %v380_v36, 5  ;;  %v697_v5 = vshrl.u32 %v2239_v45, 16  ;;  %v1705_v43 = vld [vmem:[%s2641_s1 + $0x8] sm:$0xff]  }
  0x51   : > { %877 = vrot.lane.b32.xlu0 %v2198_v58, %s1807_s9  ;;  %v674_v53 = vrot.slane %v672_v15, 5  ;;  %v2257_v6 = vcombine.low %v568_v24, %v578_v34  ;;  %v692_v55 = vsel %vm1990_vm4, %v1521_v51, %v691_v52  ;;  %v693_v56 = vrot.slane %v691_v52, 4  ;;  %1585 = vmatprep.subr.bf16.mxu0 %v1705_v43 }
  0x52   : > { %v700_v25 = vshll.u32 %v2239_v45, 16  ;;  %v670_v26 = vrot.slane %v669_v20, 4  ;;  %v684_v28 = vrot.slane %v682_v16, 5  ;;  %v710_v2 = vshrl.u32 %v2245_v22, 16  ;;  %1606 = vmatprep.subr.bf16.mxu1 %v1705_v43  ;;  %1586 = vmatpush3.bf16.msra.mxu0 %v1705_v43 }
  0x53   : > { %904 = vrot.lane.b32.xlu1 %v2213_v33, %s1808_s10  ;;  %v679_v1 = vor.u32 %v678_v48, %v674_v53  ;;  %v695_v14 = vsel %vm1990_vm4, %v693_v56, %v694_v54  ;;  %v699_v7 = vrot.slane %v697_v5, 4  ;;  %v706_v24 = vshll.u32 %v2245_v22, 16  ;;  %1609 = vmatpush3.bf16.msra.mxu1 %v1705_v43 }
  0x54   : > { %v702_v36 = vrot.slane %v700_v25, 5  ;;  %v675_v34 = vsel %vm2040_vm5, %v670_v26, %v674_v53  ;;  %v2274_v47 = vcombine.low %v692_v55, %v695_v14  ;;  %v712_v15 = vrot.slane %v710_v2, 4  ;;  %v1706_v14 = vld [vmem:[%s2641_s1 + $0x10] ss:$0 sps:$4 sm:$0x33]  }
  0x55   : > { %894 = vrot.lane.b32.xlu0 %v1980_v29, %s1808_s10  ;;  %v680_v46 = vrot.slane %v679_v1, 4  ;;  %v708_v16 = vrot.slane %v706_v24, 5  ;;  %v716_v51 = vshll.u32 %v383_v49, 16  ;;  %v1522_v52 = vrot.slane %v2239_v45, 9  ;;  %1611 = vmatprep.subr.msk.bf16.mxu0 %vm1129_vm6, %v1706_v14 }
  0x56   : > { %v703_v48 = vor.u32 %v702_v36, %v699_v7  ;;  %v482_v50 = vsel %vm2040_vm5, %v2235_v42, %v2221_v27  ;;  %v725_v53 = vrot.slane %v2245_v22, 5  ;;  %v728_v54 = vrot.slane %v383_v49, 5  ;;  %1612 = vmatprep.subr.msk.bf16.mxu1 %vm1129_vm6, %v1706_v14 }
  0x57   : > { %921 = vrot.lane.b32.xlu1 %v2138_v13, %s1809_s14  ;;  %v685_v20 = vsel %vm2040_vm5, %v680_v46, %v684_v28  ;;  %v713_v56 = vor.u32 %v712_v15, %v708_v16  ;;  %v718_v25 = vrot.slane %v716_v51, 5  ;;  %v659_v27 = vrot.slane %v657_v23, 4 }
  0x58   : > { %v2288_v5 = vcombine.low %v675_v34, %v685_v20  ;;  %v704_v55 = vrot.slane %v703_v48, 4  ;;  %v2294_v42 = vsel %vm1990_vm4, %v1522_v52, %v725_v53  ;;  %v727_v26 = vrot.slane %v725_v53, 4 }
  0x59   : > { %896 = vrot.lane.b32.xlu0 %v2217_v30, %s1808_s10  ;;  %v1523_v1 = vcombine.low %v2003_v37, %v2009_v40  ;;  %v1534_v28 = vcombine.low %v472_v38, %v482_v50  ;;  %v714_v49 = vrot.slane %v713_v56, 4  ;;  %v629_v7 = vrot.slane %v2156_v8, 5 }
  0x5a   : > { %v709_v2 = vsel %vm2040_vm5, %v704_v55, %v708_v16  ;;  %v2313_v36 = vsel %vm1990_vm4, %v727_v26, %v728_v54  ;;  %v658_v8 = vsel %vm1990_vm4, %v1520_v19, %v657_v23  ;;  %v661_v38 = vsel %vm1990_vm4, %v659_v27, %v660_v35 }
  0x5b   : > { %923 = vrot.lane.b32.xlu1 %v2257_v6, %s1809_s14  ;;  %v719_v57 = vsel %vm2040_vm5, %v714_v49, %v718_v25  ;;  %v1552_v3 = vcombine.low %v2294_v42, %v2313_v36  ;;  %v1131_v63 = vsel %vm1129_vm6, %v1706_v14, 0  ;;  %v1516_v43 = vrot.slane %v2148_v12, 9 }
  0x5c   : > { %v1551_v24 = vcombine.low %v709_v2, %v719_v57  ;;  %v631_v34 = vrot.slane %v629_v7, 4  ;;  %v632_v17 = vrot.slane %v2186_v41, 5  ;;  %1588 = vmatpush3.bf16.msra.mxu0 %v1131_v63  ;;  %v1546_v61 = vcombine.low %v658_v8, %v661_v38  ;;  %1610 = vmatpush3.bf16.msra.mxu1 %v1131_v63 }
  0x5d   : > { %913 = vrot.lane.b32.xlu0 %v2165_v39, %s1809_s14  ;;  %v630_v18 = vsel %vm1990_vm4, %v1516_v43, %v629_v7  ;;  %v1547_v32 = vcombine.low %v2204_v62, %v2207_v11 }
  0x5e   : > { %v633_v19 = vsel %vm1990_vm4, %v631_v34, %v632_v17 }
  0x5f   : > { %940 = vrot.lane.b32.xlu1 %v2174_v0, %s1810_s13  ;;  %v1542_v12 = vcombine.low %v630_v18, %v633_v19 }
  0x61   : > { %915 = vrot.lane.b32.xlu0 %v1534_v28, %s1809_s14 }
  0x63   : > { %790 = vrot.lane.b32.xlu1 %v2138_v13, %s1805_s30  ;;  %v1550_v13 = vcombine.low %v2239_v45, %v2245_v22 }
  0x65   : > { %932 = vrot.lane.b32.xlu0 %v2198_v58, %s1810_s13 }
  0x67   : > { %942 = vrot.lane.b32.xlu1 %v1546_v61, %s1810_s13 }
  0x69   : > { %782 = vrot.lane.b32.xlu0 %v2165_v39, %s1805_s30 }
  0x6b   : > { %792 = vrot.lane.b32.xlu1 %v2257_v6, %s1805_s30 }
  0x6d   : > { %934 = vrot.lane.b32.xlu0 %v1542_v12, %s1810_s13 }
  0x6f   : > { %830 = vrot.lane.b32.xlu1 %v2174_v0, %s2646_s27 }
  0x71   : > { %784 = vrot.lane.b32.xlu0 %v1534_v28, %s1805_s30  ;;  %s341_s30 = scalar_select %p340_p13, %s1789_s22, 1 }
  0x73   : > { %832 = vrot.lane.b32.xlu1 %v1546_v61, %s2646_s27 }
  0x75   : > { %822 = vrot.lane.b32.xlu0 %v2198_v58, %s2646_s27 }
  0x77   : > { %849 = vrot.lane.b32.xlu1 %v2213_v33, %s1803_s26 }
  0x79   : > { %824 = vrot.lane.b32.xlu0 %v1542_v12, %s2646_s27  ;;  %s1568_s27 = sshll.u32 %s1789_s22, 5 }
  0x7b   : > { %851 = vrot.lane.b32.xlu1 %v1547_v32, %s1803_s26 }
  0x7d   : > { %841 = vrot.lane.b32.xlu0 %v2217_v30, %s1803_s26 }
  0x7f   : > { %868 = vrot.lane.b32.xlu1 %v2257_v6, %s1806_s8 }
  0x81   : > { %843 = vrot.lane.b32.xlu0 %v2017_v44, %s1803_s26  ;;  %s2485_s26 = sshll.u32 %s1785_s21, 4 }
  0x82   : > { %p342_p0 = scmp.lt.s32.totalorder %s2485_s26, 31  ;;  %s1354_s22 = sadd.s32 %s1568_s27, %s2485_s26 }
  0x83   : > { %870 = vrot.lane.b32.xlu1 %v2288_v5, %s1806_s8 }
  0x85   : > { %860 = vrot.lane.b32.xlu0 %v1534_v28, %s1806_s8 }
  0x87   : > { %887 = vrot.lane.b32.xlu1 %v1546_v61, %s1807_s9 }
  0x89   : > { %862 = vrot.lane.b32.xlu0 %v2125_v60, %s1806_s8  ;;  %s343_s8 = scalar_select %p342_p0, %s2485_s26, 31 }
  0x8a   : > { %s1569_s26 = sshll.u32 %s1354_s22, 7 }
  0x8b   : > { %889 = vrot.lane.b32.xlu1 %v2274_v47, %s1807_s9 }
  0x8d   : > { %879 = vrot.lane.b32.xlu0 %v1542_v12, %s1807_s9 }
  0x8f   : > { %906 = vrot.lane.b32.xlu1 %v1547_v32, %s1808_s10 }
  0x91   : > { %881 = vrot.lane.b32.xlu0 %v2032_v59, %s1807_s9  ;;  %s1511_s9 = sshll.u32 %s341_s30, 5 }
  0x93   : > { %908 = vrot.lane.b32.xlu1 %v1550_v13, %s1808_s10  ;;  %v846_v39 = vpop.permute.xlu1 %845 }
  0x94   : > { %v838_v0 = vpop.permute.xlu0 %837 }
  0x95   : > { %898 = vrot.lane.b32.xlu0 %v2017_v44, %s1808_s10 }
  0x97   : > { %925 = vrot.lane.b32.xlu1 %v2288_v5, %s1809_s14  ;;  %v848_v41 = vpop.permute.xlu1 %847 }
  0x98   : > { %v2388_v58 = vpop.permute.xlu0 %839 }
  0x99   : > { %900 = vrot.lane.b32.xlu0 %v1933_v4, %s1808_s10  ;;  %s348_s10 = sadd.s32 %s1511_s9, %s343_s8 }
  0x9b   : > { %927 = vrot.lane.b32.xlu1 %v1551_v24, %s1809_s14 }
  0x9d   : > { %917 = vrot.lane.b32.xlu0 %v2125_v60, %s1809_s14 }
  0x9e   : > { %v827_v62 = vpop.permute.xlu1 %826 }
  0x9f   : > { %944 = vrot.lane.b32.xlu1 %v2274_v47, %s1810_s13 }
  0xa0   : > { %v819_v11 = vpop.permute.xlu0 %818 }
  0xa1   : > { %919 = vrot.lane.b32.xlu0 %v2102_v31, %s1809_s14  ;;  %s1512_s14 = sshll.u32 %s348_s10, 3 }
  0xa2   : > { %v829_v23 = vpop.permute.xlu1 %828  ;;  %s2499_s21 = scalar_lea.vmem %s2644_s4, %s1512_s14  ;;  %s2577_s14 = scalar_lea.hbm %s2645_s5, %s1569_s26 }
  0xa3   : > { %946 = vrot.lane.b32.xlu1 %v1552_v3, %s1810_s13 }
  0xa4   : > { %v821_v35 = vpop.permute.xlu0 %820 }
  0xa5   : > { %936 = vrot.lane.b32.xlu0 %v2032_v59, %s1810_s13 }
  0xa6   : > { %v781_v45 = vpop.permute.xlu1 %780 }
  0xa7   : > { %v954_v36 = vsel %vm948_vm7, %v1944_v10, %v781_v45 }
  0xa8   : > { %v977_v17 = vsel %vm973_vm8, %v954_v36, %v821_v35 }
  0xa9   : > { %938 = vrot.lane.b32.xlu0 %v2046_v9, %s1810_s13  ;;  %v994_v32 = vsel %vm990_vm9, %v977_v17, %v2388_v58  ;;  %s317_s13 = sand.u32 1, %s1777_s19  }
  0xaa   : > { %s1507_s30 = sshll.u32 %s317_s13, 7  ;;  %s2587_s15 = scalar_lea.sflag [#allocation3], %s317_s13 }
  0xab   : > { %v779_v60 = vpop.permute.xlu0 %778  ;;  %s2525_s0 = scalar_lea.vmem [#allocation2], %s1507_s30 }
  0xac   : > { %v951_v56 = vsel %vm948_vm7, %v1523_v1, %v779_v60  ;;  %s1357_s8 = sshll.u32 %s2525_s0, 4  ;;  %s2581_s8 = int_to_ptr.vmem [resolvable:$true] %s1357_s8 }
  0xad   : > { %v789_v22 = vpop.permute.xlu1 %788  ;;  %v975_v28 = vsel %vm973_vm8, %v951_v56, %v819_v11  ;;  %s1707_s16 = scalar_lea.vmem %s2581_s8, 2048  ;;  %p1714_p5 = scmp.lt.s32.totalorder %s2581_s8, %s1712_s12 }
  0xae   : > { %v966_v27 = vsel %vm948_vm7, %v1933_v4, %v789_v22  ;;  %v992_v14 = vsel %vm990_vm9, %v975_v28, %v838_v0  ;;  %p1708_p1 = scmp.ne.s32.totalorder %s2581_s8, %s1707_s16 }
  0xaf   : > { %v985_v1 = vsel %vm973_vm8, %v966_v27, %v829_v23 }
  0xb0   : > { %v1002_v57 = vsel %vm990_vm9, %v985_v1, %v848_v41  ;;  %p1709_p2 = pnand %p1708_p1, %p1894_p3 }
  0xb1   : > { %v865_v6 = vpop.permute.xlu1 %864 }
  0xb2   : > { %p1710_p4 = pneg %p1709_p2 }
  0xb3   : > { %v787_v46 = vpop.permute.xlu0 %786 }
  0xb4   : > { %v963_v59 = vsel %vm948_vm7, %v2017_v44, %v787_v46 }
  0xb5   : > { %v867_v47 = vpop.permute.xlu1 %866  ;;  %v983_v9 = vsel %vm973_vm8, %v963_v59, %v827_v62 }
  0xb6   : > { %v1000_v5 = vsel %vm990_vm9, %v983_v9, %v846_v39  ;;  %v1019_v38 = vsel %vm1007_vm10, %v1002_v57, %v867_v47 }
  0xb7   : > { %v857_v15 = vpop.permute.xlu0 %856  ;;  %v1017_v44 = vsel %vm1007_vm10, %v1000_v5, %v865_v6 }
  0xb8   : > { %v1009_v4 = vsel %vm1007_vm10, %v992_v14, %v857_v15 }
  0xb9   : > { %v884_v48 = vpop.permute.xlu1 %883 }
  0xba   : > { %v1034_v42 = vsel %vm1024_vm11, %v1017_v44, %v884_v48 }
  0xbb   : > { %v859_v31 = vpop.permute.xlu0 %858 }
  0xbc   : > { %v1011_v39 = vsel %vm1007_vm10, %v994_v32, %v859_v31 }
  0xbd   : > { %v886_v16 = vpop.permute.xlu1 %885 }
  0xbe   : > { %v1036_v63 = vsel %vm1024_vm11, %v1019_v38, %v886_v16 }
  0xbf   : > { %v876_v51 = vpop.permute.xlu0 %875 }
  0xc0   : > { %v1026_v3 = vsel %vm1024_vm11, %v1009_v4, %v876_v51 }
  0xc1   : > { %v903_v52 = vpop.permute.xlu1 %902 }
  0xc2   : > { %v1051_v2 = vsel %vm1041_vm12, %v1034_v42, %v903_v52 }
  0xc3   : > { %v878_v50 = vpop.permute.xlu0 %877 }
  0xc4   : > { %v1028_v0 = vsel %vm1024_vm11, %v1011_v39, %v878_v50 }
  0xc5   : > { %v905_v20 = vpop.permute.xlu1 %904 }
  0xc6   : > { %v1053_v61 = vsel %vm1041_vm12, %v1036_v63, %v905_v20 }
  0xc7   : > { %v895_v53 = vpop.permute.xlu0 %894 }
  0xc8   : > { %v1043_v24 = vsel %vm1041_vm12, %v1026_v3, %v895_v53 }
  0xc9   : > { %v922_v54 = vpop.permute.xlu1 %921 }
  0xca   : > { %v1068_v37 = vsel %vm1058_vm13, %v1051_v2, %v922_v54 }
  0xcb   : > { %v897_v55 = vpop.permute.xlu0 %896 }
  0xcc   : > { %v1045_v62 = vsel %vm1041_vm12, %v1028_v0, %v897_v55 }
  0xcd   : > { %v924_v25 = vpop.permute.xlu1 %923 }
  0xce   : > { %v1070_v18 = vsel %vm1058_vm13, %v1053_v61, %v924_v25 }
  0xcf   : > { %v914_v26 = vpop.permute.xlu0 %913 }
  0xd0   : > { %v1060_v43 = vsel %vm1058_vm13, %v1043_v24, %v914_v26 }
  0xd1   : > { %v941_v40 = vpop.permute.xlu1 %940 }
  0xd2   : > { %v1085_v49 = vsel %vm1075_vm14, %v1068_v37, %v941_v40 }
  0xd3   : > { %v916_v7 = vpop.permute.xlu0 %915  ;;  %1597 = vmatprep.mubr.msk.bf16.mxu1 %vm1112_vm15, %v1085_v49 }
  0xd4   : > { %v1062_v11 = vsel %vm1058_vm13, %v1045_v62, %v916_v7 }
  0xd5   : > { %v791_v8 = vpop.permute.xlu1 %790 }
  0xd6   : > { %v969_v56 = vsel %vm948_vm7, %v1966_v21, %v791_v8 }
  0xd7   : > { %v933_v34 = vpop.permute.xlu0 %932 }
  0xd8   : > { %v1077_v10 = vsel %vm1075_vm14, %v1060_v43, %v933_v34 }
  0xd9   : > { %1589 = vmatprep.mubr.msk.bf16.mxu0 %vm1112_vm15, %v1077_v10  ;;  %v943_v19 = vpop.permute.xlu1 %942 }
  0xda   : > { %v1087_v12 = vsel %vm1075_vm14, %v1070_v18, %v943_v19 }
  0xdb   : > { %v783_v13 = vpop.permute.xlu0 %782  ;;  %1598 = vmatmul.mubr.msk.bf16.vlgmr.msra.gmra.mrb[0].mxu1 %vm1112_vm15, %v1087_v12 }
  0xdc   : > { %v957_v21 = vsel %vm948_vm7, %v1980_v29, %v783_v13 }
  0xdd   : > { %v793_v41 = vpop.permute.xlu1 %792 }
  0xde   : > { %v972_v28 = vsel %vm948_vm7, %v2213_v33, %v793_v41 }
  0xdf   : > { %v935_v23 = vpop.permute.xlu0 %934 }
  0xe0   : > { %v1079_v35 = vsel %vm1075_vm14, %v1062_v11, %v935_v23  ;;  %v2494_v11 = vld [vmem:[%s2642_s2] ss:$0 sm:$0xff] }
  0xe1   : > { %1590 = vmatmul.mubr.msk.bf16.vlgmr.msra.gmra.mrb[0].mxu0 %vm1112_vm15, %v1079_v35  ;;  %v831_v45 = vpop.permute.xlu1 %830  ;;  %v2505_v23 = vld [vmem:[%s2643_s3] ss:$0 sm:$0xff] }
  0xe2   : > { %v987_v44 = vsel %vm973_vm8, %v969_v56, %v831_v45 }
  0xe3   : > { %v785_v60 = vpop.permute.xlu0 %784 }
  0xe4   : > { %v960_v24 = vsel %vm948_vm7, %v2217_v30, %v785_v60 }
  0xe5   : > { %v833_v58 = vpop.permute.xlu1 %832 }
  0xe6   : > { %v989_v40 = vsel %vm973_vm8, %v972_v28, %v833_v58  ;;  %v1286_v58 = vld [vmem:[%s2499_s21 + $0x50] sm:$0xff] }
  0xe7   : > { %v823_v22 = vpop.permute.xlu0 %822 }
  0xe8   : > { %v979_v4 = vsel %vm973_vm8, %v957_v21, %v823_v22 }
  0xe9   : > { %v850_v6 = vpop.permute.xlu1 %849 }
  0xea   : > { %v1004_v27 = vsel %vm990_vm9, %v987_v44, %v850_v6 }
  0xeb   : > { %v825_v46 = vpop.permute.xlu0 %824 }
  0xec   : > { %v981_v17 = vsel %vm973_vm8, %v960_v24, %v825_v46 }
  0xed   : > { %v852_v47 = vpop.permute.xlu1 %851 }
  0xee   : > { %v1006_v49 = vsel %vm990_vm9, %v989_v40, %v852_v47  ;;  %v1284_v47 = vld [vmem:[%s2499_s21 + $0x40] sm:$0xff] }
  0xef   : > { %v842_v15 = vpop.permute.xlu0 %841 }
  0xf0   : > { %v996_v57 = vsel %vm990_vm9, %v979_v4, %v842_v15 }
  0xf1   : > { %v869_v48 = vpop.permute.xlu1 %868 }
  0xf2   : > { %v1021_v26 = vsel %vm1007_vm10, %v1004_v27, %v869_v48 }
  0xf3   : > { %v844_v31 = vpop.permute.xlu0 %843 }
  0xf4   : > { %v998_v18 = vsel %vm990_vm9, %v981_v17, %v844_v31 }
  0xf5   : > { %v871_v16 = vpop.permute.xlu1 %870 }
  0xf6   : > { %v1023_v36 = vsel %vm1007_vm10, %v1006_v49, %v871_v16  ;;  %v1287_v16 = vld [vmem:[%s2499_s21 + $0x58] sm:$0xff] }
  0xf7   : > { %v861_v51 = vpop.permute.xlu0 %860  ;;  %v1279_v49 = vld [vmem:[%s2499_s21 + $0x18] sm:$0xff] }
  0xf8   : > { %v1013_v29 = vsel %vm1007_vm10, %v996_v57, %v861_v51 }
  0xf9   : > { %v888_v52 = vpop.permute.xlu1 %887 }
  0xfa   : > { %v1038_v2 = vsel %vm1024_vm11, %v1021_v26, %v888_v52 }
  0xfb   : > { %v863_v50 = vpop.permute.xlu0 %862 }
  0xfc   : > { %v1015_v30 = vsel %vm1007_vm10, %v998_v18, %v863_v50 }
  0xfd   : > { %v890_v59 = vpop.permute.xlu1 %889 }
  0xfe   : > { %v1040_v3 = vsel %vm1024_vm11, %v1023_v36, %v890_v59  ;;  %v1285_v59 = vld [vmem:[%s2499_s21 + $0x48] sm:$0xff] }
  0xff   : > { %v880_v20 = vpop.permute.xlu0 %879 }
 0x100   : > { %v1030_v63 = vsel %vm1024_vm11, %v1013_v29, %v880_v20 }
 0x101   : > { %v907_v53 = vpop.permute.xlu1 %906 }
 0x102   : > { %v1055_v1 = vsel %vm1041_vm12, %v1038_v2, %v907_v53  ;;  %v1276_v2 = vld [vmem:[%s2499_s21] sm:$0xff] }
 0x103   : > { %v882_v9 = vpop.permute.xlu0 %881 }
 0x104   : > { %v1032_v13 = vsel %vm1024_vm11, %v1015_v30, %v882_v9  ;;  %v1288_v30 = vld [vmem:[%s2499_s21 + $0x60] sm:$0xff] }
 0x105   : > { %v909_v54 = vpop.permute.xlu1 %908 }
 0x106   : > { %v1057_v38 = vsel %vm1041_vm12, %v1040_v3, %v909_v54 }
 0x107   : > { %v899_v5 = vpop.permute.xlu0 %898 }
 0x108   : > { %v1047_v61 = vsel %vm1041_vm12, %v1030_v63, %v899_v5 }
 0x109   : > { %v926_v55 = vpop.permute.xlu1 %925 }
 0x10a   : > { %v1072_v14 = vsel %vm1058_vm13, %v1055_v1, %v926_v55 }
 0x10b   : > { %v901_v25 = vpop.permute.xlu0 %900 }
 0x10c   : > { %v1049_v39 = vsel %vm1041_vm12, %v1032_v13, %v901_v25  ;;  %v1278_v25 = vld [vmem:[%s2499_s21 + $0x10] sm:$0xff] }
 0x10d   : > { %v928_v42 = vpop.permute.xlu1 %927 }
 0x10e   : > { %v1074_v43 = vsel %vm1058_vm13, %v1057_v38, %v928_v42 }
 0x10f   : > { %v918_v37 = vpop.permute.xlu0 %917 }
 0x110   : > { %v1064_v19 = vsel %vm1058_vm13, %v1047_v61, %v918_v37 }
 0x111   : > { %v945_v7 = vpop.permute.xlu1 %944 }
 0x112   : > { %v1089_v33 = vsel %vm1075_vm14, %v1072_v14, %v945_v7 }
 0x113   : > { %v920_v8 = vpop.permute.xlu0 %919  ;;  %1601 = vmatprep.mubr.msk.bf16.mxu1 %vm1112_vm15, %v1089_v33  ;;  %v1277_v33 = vld [vmem:[%s2499_s21 + $0x8] sm:$0xff] }
 0x114   : > { %v1066_v0 = vsel %vm1058_vm13, %v1049_v39, %v920_v8 }
 0x115   : > { %v947_v34 = vpop.permute.xlu1 %946 }
 0x116   : > { %v1091_v10 = vsel %vm1075_vm14, %v1074_v43, %v947_v34 }
 0x117   : > { %v937_v12 = vpop.permute.xlu0 %936  ;;  %1602 = vmatmul.mubr.msk.bf16.gmra.mrb[4].mxu1 %vm1112_vm15, %v1091_v10  ;;  %v1290_v10 = vld [vmem:[%s2499_s21 + $0x70] sm:$0xff] }
 0x118   : > { %v1081_v32 = vsel %vm1075_vm14, %v1064_v19, %v937_v12 }
 0x119   : > { %1593 = vmatprep.mubr.msk.bf16.mxu0 %vm1112_vm15, %v1081_v32 }
 0x11b   : > { %v939_v41 = vpop.permute.xlu0 %938 }
 0x11c   : > { %v1083_v62 = vsel %vm1075_vm14, %v1066_v0, %v939_v41  ;;  %v1291_v0 = vld [vmem:[%s2499_s21 + $0x78] sm:$0xff] }
 0x11d   : > { %1594 = vmatmul.mubr.msk.bf16.gmra.mrb[4].mxu0 %vm1112_vm15, %v1083_v62 }
 0x1ae   : > { %v1599_v35 = vpop.f32.mrb[0].mxu1 }
 0x1af   : > { %v1247_v45 = vmul.f32 %v1599_v35, %v2494_v11  ;;  %v1199_v60 = vpop.f32.mrb[1].mxu1 }
 0x1b0   : > { %v1245_v22 = vmul.f32 %v2494_v11, %v1199_v60  ;;  %v1600_v6 = vpop.f32.mrb[2].mxu1 }
 0x1b1   : > { %v1270_v46 = vadd.f32 %v2505_v23, %v1247_v45  ;;  %v1248_v15 = vmul.f32 %v1600_v6, %v2494_v11  ;;  %v1202_v48 = vpop.f32.mrb[3].mxu1  ;;  %v1289_v45 = vld [vmem:[%s2499_s21 + $0x68] sm:$0xff] }
 0x1b2   : > { %v1268_v31 = vadd.f32 %v2505_v23, %v1245_v22  ;;  %v1246_v51 = vmul.f32 %v2494_v11, %v1202_v48  ;;  %v1282_v48 = vld [vmem:[%s2499_s21 + $0x30] sm:$0xff] }
 0x1b3   : > { %v1302_v52 = vadd.f32 %v1286_v58, %v1270_v46  ;;  %v1271_v50 = vadd.f32 %v2505_v23, %v1248_v15 }
 0x1b4   : > { %v1591_v20 = vpop.f32.mrb[0].mxu0  ;;  %v1300_v53 = vadd.f32 %v1284_v47, %v1268_v31  ;;  %v1269_v9 = vadd.f32 %v2505_v23, %v1246_v51 }
 0x1b5   : > { %v1239_v54 = vmul.f32 %v1591_v20, %v2494_v11  ;;  %v1318_v5 = vmax.f32 %v1302_v52, 0.0  ;;  %v1167_v55 = vpop.f32.mrb[1].mxu0  ;;  %v1303_v56 = vadd.f32 %v1287_v16, %v1271_v50 }
 0x1b6   : > { %v1237_v44 = vmul.f32 %v2494_v11, %v1167_v55  ;;  %v1316_v27 = vmax.f32 %v1300_v53, 0.0  ;;  %v1592_v42 = vpop.f32.mrb[2].mxu0  ;;  %v1301_v26 = vadd.f32 %v1285_v59, %v1269_v9  ;;  %v1280_v59 = vld [vmem:[%s2499_s21 + $0x20] sm:$0xff] }
 0x1b7   : > { %v1262_v28 = vadd.f32 %v2505_v23, %v1239_v54  ;;  %1334 = vst [vmem:[%s2525_s0 + $0x50] sm:$0xff] %v1318_v5  ;;  %v1240_v37 = vmul.f32 %v1592_v42, %v2494_v11  ;;  %v1319_v40 = vmax.f32 %v1303_v56, 0.0  ;;  %v1170_v1 = vpop.f32.mrb[3].mxu0  ;;  %v1283_v5 = vld [vmem:[%s2499_s21 + $0x38] sm:$0xff] }
 0x1b8   : > { %v1260_v21 = vadd.f32 %v2505_v23, %v1237_v44  ;;  %1332 = vst [vmem:[%s2525_s0 + $0x40] sm:$0xff] %v1316_v27  ;;  %v1238_v14 = vmul.f32 %v2494_v11, %v1170_v1  ;;  %v1317_v7 = vmax.f32 %v1301_v26, 0.0  ;;  %v1281_v27 = vld [vmem:[%s2499_s21 + $0x28] sm:$0xff]  ;;  %s1713_s21 = scalar_lea.vmem %s1712_s12, 4096 }
 0x1b9   : > { %v1294_v4 = vadd.f32 %v1278_v25, %v1262_v28  ;;  %v1263_v36 = vadd.f32 %v2505_v23, %v1240_v37  ;;  %1335 = vst [vmem:[%s2525_s0 + $0x58] sm:$0xff] %v1319_v40  ;;  %p1715_p6 = scmp.lt.s32.totalorder %s1713_s21, %s1707_s16 }
 0x1ba   : > { %v1292_v57 = vadd.f32 %v1276_v2, %v1260_v21  ;;  %v1261_v3 = vadd.f32 %v2505_v23, %v1238_v14  ;;  %1333 = vst [vmem:[%s2525_s0 + $0x48] sm:$0xff] %v1317_v7 }
 0x1bb   : > { %v1310_v8 = vmax.f32 %v1294_v4, 0.0  ;;  %v1295_v29 = vadd.f32 %v1279_v49, %v1263_v36  ;;  %p1716_p7 = por %p1715_p6, %p1714_p5 }
 0x1bc   : > { %v1308_v38 = vmax.f32 %v1292_v57, 0.0  ;;  %v1293_v24 = vadd.f32 %v1277_v33, %v1261_v3 }
 0x1bd   : > { %1326 = vst [vmem:[%s2525_s0 + $0x10] sm:$0xff] %v1310_v8  ;;  %v1311_v63 = vmax.f32 %v1295_v29, 0.0  ;;  %p1717_p9 = pnand %p1716_p7, %p1710_p4 }
 0x1be   : > { %1324 = vst [vmem:[%s2525_s0] sm:$0xff] %v1308_v38  ;;  %v1309_v43 = vmax.f32 %v1293_v24, 0.0 }
 0x1bf   : > { %1327 = vst [vmem:[%s2525_s0 + $0x18] sm:$0xff] %v1311_v63 }
 0x1c0   : > { %1325 = vst [vmem:[%s2525_s0 + $0x8] sm:$0xff] %v1309_v43 }
 0x1ea   : > { %v1603_v34 = vpop.f32.mrb[4].mxu1 }
 0x1eb   : > { %v1251_v17 = vmul.f32 %v1603_v34, %v2494_v11  ;;  %v1215_v61 = vpop.f32.mrb[5].mxu1 }
 0x1ec   : > { %v1249_v18 = vmul.f32 %v2494_v11, %v1215_v61  ;;  %v1604_v19 = vpop.f32.mrb[6].mxu1 }
 0x1ed   : > { %v1274_v12 = vadd.f32 %v2505_v23, %v1251_v17  ;;  %v1252_v32 = vmul.f32 %v1604_v19, %v2494_v11  ;;  %v1218_v13 = vpop.f32.mrb[7].mxu1 }
 0x1ee   : > { %v1272_v39 = vadd.f32 %v2505_v23, %v1249_v18  ;;  %v1250_v41 = vmul.f32 %v2494_v11, %v1218_v13 }
 0x1ef   : > { %v1306_v62 = vadd.f32 %v1290_v10, %v1274_v12  ;;  %v1275_v35 = vadd.f32 %v2505_v23, %v1252_v32 }
 0x1f0   : > { %v1595_v60 = vpop.f32.mrb[4].mxu0  ;;  %v1304_v58 = vadd.f32 %v1288_v30, %v1272_v39  ;;  %v1273_v22 = vadd.f32 %v2505_v23, %v1250_v41 }
 0x1f1   : > { %v1243_v6 = vmul.f32 %v1595_v60, %v2494_v11  ;;  %v1322_v46 = vmax.f32 %v1306_v62, 0.0  ;;  %v1183_v47 = vpop.f32.mrb[5].mxu0  ;;  %v1307_v15 = vadd.f32 %v1291_v0, %v1275_v35 }
 0x1f2   : > { %v1241_v31 = vmul.f32 %v2494_v11, %v1183_v47  ;;  %v1320_v16 = vmax.f32 %v1304_v58, 0.0  ;;  %v1596_v51 = vpop.f32.mrb[6].mxu0  ;;  %v1305_v52 = vadd.f32 %v1289_v45, %v1273_v22 }
 0x1f3   : > { %v1266_v50 = vadd.f32 %v2505_v23, %v1243_v6  ;;  %1338 = vst [vmem:[%s2525_s0 + $0x70] sm:$0xff] %v1322_v46  ;;  %v1244_v20 = vmul.f32 %v1596_v51, %v2494_v11  ;;  %v1323_v53 = vmax.f32 %v1307_v15, 0.0  ;;  %v1186_v9 = vpop.f32.mrb[7].mxu0 }
 0x1f4   : > { %v1264_v54 = vadd.f32 %v2505_v23, %v1241_v31  ;;  %1336 = vst [vmem:[%s2525_s0 + $0x60] sm:$0xff] %v1320_v16  ;;  %v1242_v55 = vmul.f32 %v2494_v11, %v1186_v9  ;;  %v1321_v56 = vmax.f32 %v1305_v52, 0.0 }
 0x1f5   : > { %v1298_v25 = vadd.f32 %v1282_v48, %v1266_v50  ;;  %v1267_v44 = vadd.f32 %v2505_v23, %v1244_v20  ;;  %1339 = vst [vmem:[%s2525_s0 + $0x78] sm:$0xff] %v1323_v53 }
 0x1f6   : > { %v1296_v42 = vadd.f32 %v1280_v59, %v1264_v54  ;;  %v1265_v26 = vadd.f32 %v2505_v23, %v1242_v55  ;;  %1337 = vst [vmem:[%s2525_s0 + $0x68] sm:$0xff] %v1321_v56 }
 0x1f7   : > { %v1314_v28 = vmax.f32 %v1298_v25, 0.0  ;;  %v1299_v2 = vadd.f32 %v1283_v5, %v1267_v44 }
 0x1f8   : > { %v1312_v11 = vmax.f32 %v1296_v42, 0.0  ;;  %v1297_v37 = vadd.f32 %v1281_v27, %v1265_v26 }
 0x1f9   : > { %1330 = vst [vmem:[%s2525_s0 + $0x30] sm:$0xff] %v1314_v28  ;;  %v1315_v40 = vmax.f32 %v1299_v2, 0.0 }
 0x1fa   : > { %1328 = vst [vmem:[%s2525_s0 + $0x20] sm:$0xff] %v1312_v11  ;;  %v1313_v1 = vmax.f32 %v1297_v37, 0.0 }
 0x1fb   : > { %1331 = vst [vmem:[%s2525_s0 + $0x38] sm:$0xff] %v1315_v40 }
 0x1fc   : > { %1329 = vst [vmem:[%s2525_s0 + $0x28] sm:$0xff] %v1313_v1 }
 0x1fd   : > { %1720 = shalt.err (!%p1717_p9)
}
 0x1fe   : > { %s1721_s13 = scalar_lea.hbm %s2577_s14, 2048  ;;  %s1725_s27 = scalar_lea.hbm %s2645_s5, 8192 }
 0x1ff   : > { %p1722_p10 = scmp.ne.s32.totalorder %s2577_s14, %s1721_s13  ;;  %p1726_p13 = scmp.lt.u32.totalorder %s2577_s14, %s2645_s5 }
 0x200   : > { %p1727_p0 = scmp.lt.u32.totalorder %s1725_s27, %s1721_s13  ;;  %p1729_p2 = scmp.lt.u32.totalorder %s1721_s13, %s2577_s14 }
 0x201   : > { %p1723_p11 = pnand %p1722_p10, %p1894_p3 }
 0x202   : > { %p1728_p1 = por %p1727_p0, %p1726_p13 }
 0x203   : > { %p1724_p12 = pneg %p1723_p11 }
 0x204   : > { %p1730_p4 = por %p1729_p2, %p1728_p1 }
 0x206   : > { %p1731_p5 = pnand %p1730_p4, %p1724_p12 }
 0x208   : > { %1734 = shalt.err (!%p1731_p5)
}
 0x209   : > { %s1812_s9 = smov 128   ;;  %s2655_s10 = smov 8  }
 0x20a   : > { %1614 = dma.vmem_to_hbm [thread:$0]  (%p1894_p3), %s2581_s8, 2048, %s2577_s14, %s2587_s15, %s1812_s9, %s1812_s9, %s2655_s10  }
 0x20b PF: > { %p1620_p6 = scmp.ge.s32.totalorder %s1801_s25, 2  ;;  %s1372_s16 = sand.u32 1, %s1773_s18  }
 0x20c   : > { %s1373_s17 = scalar_lea.sflag [#allocation3], %s1372_s16 }
 0x20d   : > { %p1617_p7 = pnand %p1620_p6, %p1903_p8 }
 0x20f   : > { %1768 = dma.done.wait (!%p1617_p7), %s1373_s17, 2048  }
 0x210   : > { %1770 = vsyncadd (!%p1617_p7), %s1373_s17, 4294965248  ;;  %s18_s25 = sadd.s32 1, %s1801_s25   ;;  %s2656_s18 = smov %s1777_s19 }
 0x211   : > { %p15_p9 = scmp.ge.s32.totalorder %s18_s25, 6   ;;  %s2657_s19 = smov %s1781_s20 }
 0x212   : > { %s2658_s20 = smov %s1912_s11  ;;  %s2659_s21 = smov %s1793_s23 }
 0x213   : > { %s2660_s22 = smov %s1797_s24  ;;  %s2661_s23 = smov %s2664_s28 }
 0x214   : > { %s2662_s24 = smov %s2668_s29  ;;  %17 = sbr.rel (!%p15_p9) target bundleno = 7 (0x7), region = 87 }
 0x21b   :  { %1378 = vsyncpa [#allocation3], 1 }
 0x21c   :  { %1380 = vsyncpa [#allocation3 + $0x1], 1 }

</bundles_post_ra>
